<compile_context>
chip_gen: v7x
topology: tpu7x:2x2x1
jax: 0.10.0
libtpu: 0.0.40
codegen_flags: <defaults>
</compile_context>

<pallas_src>
import math

import jax
import jax.numpy as jnp
from jax.experimental import pallas as pl
from jax.experimental.pallas import tpu as pltpu


# ----------------------------------------------------------------------------
# Kernel 1: global max pool over S  +  conv_du (1x1 -> ReLU -> 1x1 -> sigmoid)
#           +  NLE modulation  (m = sigmoid(conv_du(max(x))) * beta + gamma).
# grid = (N, num_s_tiles); S is the last ("arbitrary") reduction axis; the
# per-channel running max lives in a VMEM scratch.
# ----------------------------------------------------------------------------
def _maxpool_modulate_kernel(x_ref, w1t_ref, w2_ref, beta_ref, gamma_ref,
                             m_ref, acc_ref):
    s = pl.program_id(1)

    @pl.when(s == 0)
    def _init():
        acc_ref[...] = jnp.full(acc_ref.shape, -jnp.inf, acc_ref.dtype)

    # Per-channel max of this (C, TILE_S) tile -> (C, 1)  (lane reduce / XLU).
    tile_max = jnp.max(x_ref[...].astype(jnp.float32), axis=-1, keepdims=True)
    acc_ref[...] = jnp.maximum(acc_ref[...], tile_max)

    @pl.when(s == pl.num_programs(1) - 1)
    def _finalize():
        y = acc_ref[...]                                             # (C, 1)
        # 1x1 conv C -> Cr (+ ReLU):  h[r] = relu(sum_c w1[r, c] * y[c]).
        # w1t_ref holds w1^T (C, Cr): broadcast y over lanes, reduce sublanes.
        h = jnp.maximum(jnp.sum(w1t_ref[...] * y, axis=0, keepdims=True),
                        0.0)                                         # (1, Cr)
        # 1x1 conv Cr -> C (+ sigmoid): g[c] = sum_r w2[c, r] * h[r].
        # w2_ref is (C, Cr): broadcast h over sublanes, reduce lanes.
        g = jnp.sum(w2_ref[...] * h, axis=1, keepdims=True)          # (C, 1)
        sg = jax.nn.sigmoid(g)
        m = (sg * beta_ref[...].astype(jnp.float32)
             + gamma_ref[...].astype(jnp.float32))
        m_ref[...] = m.astype(m_ref.dtype)                           # (C, 1)


# ----------------------------------------------------------------------------
# Kernel 2: out = x * m   (m broadcast along the lane-dense spatial axis).
# ----------------------------------------------------------------------------
def _scale_kernel(x_ref, m_ref, o_ref):
    o_ref[...] = (x_ref[...].astype(jnp.float32)
                  * m_ref[...].astype(jnp.float32)).astype(o_ref.dtype)


def _choose_tile_s(s_total, channels, budget_bytes=2 << 20):
    """Largest TILE_S (multiple of 128) whose (C, TILE_S) f32 tile fits the
    budget; capped at the (128-rounded) total spatial extent."""
    t = (budget_bytes // (channels * 4)) // 128 * 128
    t = max(t, 128)
    return min(t, pl.cdiv(s_total, 128) * 128)


# ----------------------------------------------------------------------------
# Wrapper
# ----------------------------------------------------------------------------
def calayer_wnle_forward(x, noise_feat, w1, w2, *, tile_s=None):
    """CALayer_wNLE.forward.

    x:          (N, C, D, H, W) float32
    noise_feat: (N, 2*C)   -- first half = beta, second half = gamma
    w1:         (C//r, C)  -- 1x1x1 conv weight (channel -> channel//r), no bias
    w2:         (C, C//r)  -- 1x1x1 conv weight (channel//r -> channel), no bias
    """
    N, C, D, H, W = x.shape
    S = D * H * W
    Cr = w1.shape[0]
    assert noise_feat.shape == (N, 2 * C)
    assert w1.shape == (Cr, C) and w2.shape == (C, Cr)

    beta = noise_feat[:, :C].reshape(N, C, 1).astype(jnp.float32)
    gamma = noise_feat[:, C:].reshape(N, C, 1).astype(jnp.float32)
    w1t = jnp.transpose(w1).astype(jnp.float32)          # (C, Cr)
    w2f = w2.astype(jnp.float32)                         # (C, Cr)

    if tile_s is None:
        tile_s = _choose_tile_s(S, C)
    tile_s = max(128, (tile_s // 128) * 128)
    s_pad = pl.cdiv(S, tile_s) * tile_s
    num_s = s_pad // tile_s

    x3 = x.reshape(N, C, S)
    if s_pad != S:
        # Pad the spatial axis with -max so the global max is unaffected;
        # padded output columns are sliced off below.
        x3 = jnp.pad(x3, ((0, 0), (0, 0), (0, s_pad - S)),
                     constant_values=jnp.finfo(jnp.float32).min)

    itemsize = 4
    vmem_limit = 32 * 1024 * 1024   # safe on v5e/v6e/v7x; tiles are ~2 MiB each

    # ---- kernel 1: fused max-pool + conv_du + modulation -> m (N, C, 1) -----
    m = pl.pallas_call(
        _maxpool_modulate_kernel,
        out_shape=jax.ShapeDtypeStruct((N, C, 1), jnp.float32),
        grid=(N, num_s),
        in_specs=[
            pl.BlockSpec((pl.Squeezed(), C, tile_s), lambda n, s: (n, 0, s)),
            pl.BlockSpec((C, Cr), lambda n, s: (0, 0)),       # VMEM-resident
            pl.BlockSpec((C, Cr), lambda n, s: (0, 0)),       # VMEM-resident
            pl.BlockSpec((pl.Squeezed(), C, 1), lambda n, s: (n, 0, 0)),
            pl.BlockSpec((pl.Squeezed(), C, 1), lambda n, s: (n, 0, 0)),
        ],
        out_specs=pl.BlockSpec((pl.Squeezed(), C, 1), lambda n, s: (n, 0, 0)),
        scratch_shapes=[pltpu.VMEM((C, 1), jnp.float32)],
        compiler_params=pltpu.CompilerParams(
            dimension_semantics=("parallel", "arbitrary"),
            vmem_limit_bytes=vmem_limit),
        cost_estimate=pl.CostEstimate(
            flops=int(N * (C * s_pad + 4 * C * Cr + 2 * C)),
            transcendentals=int(N * C),
            bytes_accessed=int(N * C * s_pad * itemsize
                               + N * 3 * C * itemsize + 2 * C * Cr * itemsize)),
    )(x3, w1t, w2f, beta, gamma)

    # ---- kernel 2: out = x * m (lane-dense elementwise scale) ---------------
    out3 = pl.pallas_call(
        _scale_kernel,
        out_shape=jax.ShapeDtypeStruct((N, C, s_pad), x.dtype),
        grid=(N, num_s),
        in_specs=[
            pl.BlockSpec((pl.Squeezed(), C, tile_s), lambda n, s: (n, 0, s)),
            pl.BlockSpec((pl.Squeezed(), C, 1), lambda n, s: (n, 0, 0)),
        ],
        out_specs=pl.BlockSpec((pl.Squeezed(), C, tile_s),
                               lambda n, s: (n, 0, s)),
        compiler_params=pltpu.CompilerParams(
            dimension_semantics=("parallel", "parallel"),
            vmem_limit_bytes=vmem_limit),
        cost_estimate=pl.CostEstimate(
            flops=int(N * C * s_pad),
            transcendentals=0,
            bytes_accessed=int(2 * N * C * s_pad * itemsize)),
    )(x3, m)

    if s_pad != S:
        out3 = out3[:, :, :S]
    return out3.reshape(N, C, D, H, W)


# ----------------------------------------------------------------------------
# Pure-JAX reference (mirrors the PyTorch module, NCDHW)
# ----------------------------------------------------------------------------
def calayer_wnle_reference(x, noise_feat, w1, w2):
    N, C = x.shape[0], x.shape[1]
    beta = noise_feat[:, :C]
    gamma = noise_feat[:, C:]
    y = jnp.max(x, axis=(2, 3, 4), keepdims=True)          # AdaptiveMaxPool3d(1)
    h = jnp.maximum(jnp.einsum("ncdhw,rc->nrdhw", y, w1), 0.0)
    sg = jax.nn.sigmoid(jnp.einsum("nrdhw,cr->ncdhw", h, w2))
    m = (sg * beta[:, :, None, None, None]
         + gamma[:, :, None, None, None])
    return x * m


# ----------------------------------------------------------------------------
if __name__ == "__main__":
    key = jax.random.PRNGKey(0)
    # Small config consistent with the module: channel=16, reduction=4,
    # NLE_dim = 2*channel (beta/gamma each of size channel).
    N, C, D, H, W = 2, 16, 4, 16, 16        # S = 1024 -> 4 spatial tiles of 256
    reduction = 4
    Cr = C // reduction
    NLE_dim = 2 * C

    kx, kn, k1, k2 = jax.random.split(key, 4)
    x = jax.random.normal(kx, (N, C, D, H, W), jnp.float32)
    noise_feat = jax.random.normal(kn, (N, NLE_dim), jnp.float32)
    b1 = 1.0 / math.sqrt(C)
    w1 = jax.random.uniform(k1, (Cr, C), jnp.float32, minval=-b1, maxval=b1)
    b2 = 1.0 / math.sqrt(Cr)
    w2 = jax.random.uniform(k2, (C, Cr), jnp.float32, minval=-b2, maxval=b2)

    # Pallas forward (explicit small tile to exercise the spatial grid).
    out = calayer_wnle_forward(x, noise_feat, w1, w2, tile_s=256)
    jax.block_until_ready(out)

    # Verify against the pure-JAX reference of the PyTorch module.
    ref = calayer_wnle_reference(x, noise_feat, w1, w2)
    err = float(jnp.max(jnp.abs(out - ref)))
    assert jnp.allclose(out, ref, rtol=1e-4, atol=1e-4), f"max abs err {err}"

    print("KERNEL_OK")
</pallas_src>

<mosaic_0001>
module attributes {stable_mosaic.version = 11 : i64} {
  func.func @_maxpool_modulate_kernel(%arg0: i32, %arg1: i32, %arg2: memref<1x16x256xf32, #tpu.memory_space<vmem>>, %arg3: memref<16x4xf32, #tpu.memory_space<vmem>>, %arg4: memref<16x4xf32, #tpu.memory_space<vmem>>, %arg5: memref<1x16x1xf32, #tpu.memory_space<vmem>>, %arg6: memref<1x16x1xf32, #tpu.memory_space<vmem>>, %arg7: memref<1x16x1xf32, #tpu.memory_space<vmem>>, %arg8: memref<16x1xf32, #tpu.memory_space<vmem>>) attributes {dimension_semantics = [#tpu.dimension_semantics<parallel>, #tpu.dimension_semantics<arbitrary>], iteration_bounds = array<i64: 2, 4>, scalar_prefetch = 0 : i64, scratch_operands = 1 : i64, tpu.core_type = #tpu.core_type<tc>, window_params = [{transform_indices = @transform_0, window_bounds = array<i64: 1, 16, 256>}, {pipeline_mode = #tpu.pipeline_mode<synchronous>, transform_indices = @transform_1, window_bounds = array<i64: 16, 4>}, {pipeline_mode = #tpu.pipeline_mode<synchronous>, transform_indices = @transform_2, window_bounds = array<i64: 16, 4>}, {transform_indices = @transform_3, window_bounds = array<i64: 1, 16, 1>}, {transform_indices = @transform_4, window_bounds = array<i64: 1, 16, 1>}, {transform_indices = @transform_5, window_bounds = array<i64: 1, 16, 1>}]} {
    %c0_i32 = arith.constant 0 : i32
    %0 = arith.cmpi eq, %arg1, %c0_i32 : i32
    %1 = arith.extui %0 : i1 to i32
    %c0_i32_0 = arith.constant 0 : i32
    %2 = arith.cmpi ne, %1, %c0_i32_0 : i32
    scf.if %2 {
      %cst_8 = arith.constant 0xFF800000 : f32
      %13 = vector.broadcast %cst_8 : f32 to vector<16x1xf32>
      %c0_9 = arith.constant 0 : index
      %c0_10 = arith.constant 0 : index
      %14 = vector.load %arg8[%c0_9, %c0_10] : memref<16x1xf32, #tpu.memory_space<vmem>>, vector<16x1xf32>
      tpu.vector_store %arg8[%c0_9, %c0_10], %13 {strides = array<i32>} : memref<16x1xf32, #tpu.memory_space<vmem>>, vector<16x1xf32>,
    } else {
    }
    %c0 = arith.constant 0 : index
    %c0_1 = arith.constant 0 : index
    %c0_2 = arith.constant 0 : index
    %3 = vector.load %arg2[%c0, %c0_1, %c0_2] : memref<1x16x256xf32, #tpu.memory_space<vmem>>, vector<1x16x256xf32>
    %4 = vector.shape_cast %3 : vector<1x16x256xf32> to vector<16x256xf32>
    %cst = arith.constant dense<0xFF800000> : vector<16xf32>
    %5 = vector.multi_reduction <maximumf>, %4, %cst [1] : vector<16x256xf32> to vector<16xf32>
    %6 = vector.shape_cast %5 : vector<16xf32> to vector<16x1xf32>
    %c0_3 = arith.constant 0 : index
    %c0_4 = arith.constant 0 : index
    %7 = vector.load %arg8[%c0_3, %c0_4] : memref<16x1xf32, #tpu.memory_space<vmem>>, vector<16x1xf32>
    %8 = arith.maximumf %7, %6 : vector<16x1xf32>
    %c0_5 = arith.constant 0 : index
    %c0_6 = arith.constant 0 : index
    %9 = vector.load %arg8[%c0_5, %c0_6] : memref<16x1xf32, #tpu.memory_space<vmem>>, vector<16x1xf32>
    tpu.vector_store %arg8[%c0_5, %c0_6], %8 {strides = array<i32>} : memref<16x1xf32, #tpu.memory_space<vmem>>, vector<16x1xf32>,
    %c3_i32 = arith.constant 3 : i32
    %10 = arith.cmpi eq, %arg1, %c3_i32 : i32
    %11 = arith.extui %10 : i1 to i32
    %c0_i32_7 = arith.constant 0 : i32
    %12 = arith.cmpi ne, %11, %c0_i32_7 : i32
    scf.if %12 {
      %c0_8 = arith.constant 0 : index
      %c0_9 = arith.constant 0 : index
      %13 = vector.load %arg8[%c0_8, %c0_9] : memref<16x1xf32, #tpu.memory_space<vmem>>, vector<16x1xf32>
      %c0_10 = arith.constant 0 : index
      %c0_11 = arith.constant 0 : index
      %14 = vector.load %arg3[%c0_10, %c0_11] : memref<16x4xf32, #tpu.memory_space<vmem>>, vector<16x4xf32>
      %15 = vector.broadcast %13 : vector<16x1xf32> to vector<16x4xf32>
      %16 = arith.mulf %14, %15 : vector<16x4xf32>
      %cst_12 = arith.constant dense<0.000000e+00> : vector<4xf32>
      %17 = vector.multi_reduction <add>, %16, %cst_12 [0] : vector<16x4xf32> to vector<4xf32>
      %18 = vector.shape_cast %17 : vector<4xf32> to vector<1x4xf32>
      %cst_13 = arith.constant 0.000000e+00 : f32
      %19 = vector.broadcast %cst_13 : f32 to vector<1x4xf32>
      %20 = arith.maximumf %18, %19 : vector<1x4xf32>
      %c0_14 = arith.constant 0 : index
      %c0_15 = arith.constant 0 : index
      %21 = vector.load %arg4[%c0_14, %c0_15] : memref<16x4xf32, #tpu.memory_space<vmem>>, vector<16x4xf32>
      %22 = vector.broadcast %20 : vector<1x4xf32> to vector<16x4xf32>
      %23 = arith.mulf %21, %22 : vector<16x4xf32>
      %cst_16 = arith.constant dense<0.000000e+00> : vector<16xf32>
      %24 = vector.multi_reduction <add>, %23, %cst_16 [1] : vector<16x4xf32> to vector<16xf32>
      %25 = vector.shape_cast %24 : vector<16xf32> to vector<16x1xf32>
      %26 = arith.negf %25 : vector<16x1xf32>
      %27 = math.exp %26 : vector<16x1xf32>
      %cst_17 = arith.constant 1.000000e+00 : f32
      %28 = vector.broadcast %cst_17 : f32 to vector<16x1xf32>
      %29 = arith.addf %28, %27 : vector<16x1xf32>
      %30 = arith.divf %28, %29 : vector<16x1xf32>
      %c0_18 = arith.constant 0 : index
      %c0_19 = arith.constant 0 : index
      %c0_20 = arith.constant 0 : index
      %31 = vector.load %arg5[%c0_18, %c0_19, %c0_20] : memref<1x16x1xf32, #tpu.memory_space<vmem>>, vector<1x16x1xf32>
      %32 = vector.shape_cast %31 : vector<1x16x1xf32> to vector<16x1xf32>
      %33 = arith.mulf %30, %32 : vector<16x1xf32>
      %c0_21 = arith.constant 0 : index
      %c0_22 = arith.constant 0 : index
      %c0_23 = arith.constant 0 : index
      %34 = vector.load %arg6[%c0_21, %c0_22, %c0_23] : memref<1x16x1xf32, #tpu.memory_space<vmem>>, vector<1x16x1xf32>
      %35 = vector.shape_cast %34 : vector<1x16x1xf32> to vector<16x1xf32>
      %36 = arith.addf %33, %35 : vector<16x1xf32>
      %c0_24 = arith.constant 0 : index
      %c0_25 = arith.constant 0 : index
      %c0_26 = arith.constant 0 : index
      %37 = vector.load %arg7[%c0_24, %c0_25, %c0_26] : memref<1x16x1xf32, #tpu.memory_space<vmem>>, vector<1x16x1xf32>
      %38 = vector.shape_cast %37 : vector<1x16x1xf32> to vector<16x1xf32>
      %39 = vector.shape_cast %36 : vector<16x1xf32> to vector<1x16x1xf32>
      tpu.vector_store %arg7[%c0_24, %c0_25, %c0_26], %39 {strides = array<i32>} : memref<1x16x1xf32, #tpu.memory_space<vmem>>, vector<1x16x1xf32>,
    } else {
    }
    return
  }
  func.func @transform_0(%arg0: i32, %arg1: i32) -> (i32, i32, i32) {
    %c0_i32 = arith.constant 0 : i32
    %c0_i32_0 = arith.constant 0 : i32
    return %arg0, %c0_i32, %arg1 : i32, i32, i32
  }
  func.func @transform_1(%arg0: i32, %arg1: i32) -> (i32, i32) {
    %c0_i32 = arith.constant 0 : i32
    %c0_i32_0 = arith.constant 0 : i32
    %c0_i32_1 = arith.constant 0 : i32
    return %c0_i32, %c0_i32_0 : i32, i32
  }
  func.func @transform_2(%arg0: i32, %arg1: i32) -> (i32, i32) {
    %c0_i32 = arith.constant 0 : i32
    %c0_i32_0 = arith.constant 0 : i32
    %c0_i32_1 = arith.constant 0 : i32
    return %c0_i32, %c0_i32_0 : i32, i32
  }
  func.func @transform_3(%arg0: i32, %arg1: i32) -> (i32, i32, i32) {
    %c0_i32 = arith.constant 0 : i32
    %c0_i32_0 = arith.constant 0 : i32
    %c0_i32_1 = arith.constant 0 : i32
    return %arg0, %c0_i32, %c0_i32_0 : i32, i32, i32
  }
  func.func @transform_4(%arg0: i32, %arg1: i32) -> (i32, i32, i32) {
    %c0_i32 = arith.constant 0 : i32
    %c0_i32_0 = arith.constant 0 : i32
    %c0_i32_1 = arith.constant 0 : i32
    return %arg0, %c0_i32, %c0_i32_0 : i32, i32, i32
  }
  func.func @transform_5(%arg0: i32, %arg1: i32) -> (i32, i32, i32) {
    %c0_i32 = arith.constant 0 : i32
    %c0_i32_0 = arith.constant 0 : i32
    %c0_i32_1 = arith.constant 0 : i32
    return %arg0, %c0_i32, %c0_i32_0 : i32, i32, i32
  }
}

</mosaic_0001>

<bundles_post_ra>
// kernel: tpu_custom_call.1
= control target key start
LH: loop header
LB: loop body
LE: loop exit
PB: predicated region body
PF: predicated region fallthrough
CT: control target
= control target key end

     0   :  { %s927_s0 = inlined_call_operand.hbm [shape: f32[2,16,1024], index: 0, kind: input, shape index: {}]   ;;  %s928_s1 = inlined_call_operand.vmem [shape: f32[16,4], index: 1, kind: input, shape index: {}]   ;;  %s929_s2 = inlined_call_operand.vmem [shape: f32[16,4], index: 2, kind: input, shape index: {}]   ;;  %s930_s3 = inlined_call_operand.vmem [shape: f32[2,16,1], index: 3, kind: input, shape index: {}]   ;;  %s931_s4 = inlined_call_operand.vmem [shape: f32[2,16,1], index: 4, kind: input, shape index: {}]   ;;  %s932_s5 = inlined_call_operand.vmem [shape: f32[2,16,1], index: 5, kind: output, shape index: {}]  }
   0x1   :  { %935 = sst [smem:[#allocation7_spill]] %s929_s2 }
   0x2   :  { %10 = vsyncpa [#allocation4], 0 }
   0x3   :  { %12 = vsyncpa [#allocation4 + $0x1], 0  ;;  %s738_s18 = smov 0   ;;  %s740_s19 = smov 0  }
   0x4   :  { %s742_s20 = smov 0   ;;  %s744_s21 = smov 0  }
   0x5   :  { %s746_s22 = smov 0   ;;  %s748_s23 = smov 0  }
   0x6   :  { %s750_s24 = smov 0   ;;  %s752_s25 = smov 0  }
   0x7 LB: > { %s494_s26 = sadd.s32 4294967295, %s700_s25   ;;  %s27_s27 = sadd.s32 1, %s692_s23  ;;  %s700_s25 = sphi %s752_s25, %s18_s25   ;;  %s696_s24 = sphi %s750_s24, %s948_s24   ;;  %s692_s23 = sphi %s748_s23, %s947_s23   ;;  %s688_s22 = sphi %s746_s22, %s946_s22   ;;  %s684_s21 = sphi %s744_s21, %s945_s21   ;;  %s680_s20 = sphi %s742_s20, %s944_s20   ;;  %s676_s19 = sphi %s740_s19, %s943_s19   ;;  %s672_s18 = sphi %s738_s18, %s942_s18  }
   0x8   : > { %p28_p0 = scmp.ge.s32.totalorder %s27_s27, 4  ;;  %s30_s28 = sadd.s32 1, %s696_s24 }
   0x9   : > { %s39_s29 = sadd.s32 1, %s680_s20  ;;  %p46_p1 = scmp.ne.s32.totalorder %s680_s20, %s676_s19 }
   0xa   : > { %s950_s27 = smov (%p28_p0, %s27_s27), 0  ;;  %s952_s28 = smov (!%p28_p0, %s30_s28), %s696_s24 }
   0xb   : > { %936 = sst [smem:[#allocation6_spill]] %s950_s27  ;;  %s35_s30 = ssub.s32 %s692_s23, %s950_s27 }
   0xc   : > { %p47_p2 = scmp.eq.s32.totalorder %s700_s25, 0  ;;  %p32_p3 = scmp.ge.s32.totalorder %s952_s28, 2 }
   0xd   : > { %p52_p4 = scmp.ne.s32.totalorder %s676_s19, %s672_s18  ;;  %p53_p6 = scmp.eq.s32.totalorder %s494_s26, 0 }
   0xe   : > { %p789_p5 = por %p47_p2, %p46_p1  ;;  %s954_s28 = smov (%p32_p3, %s952_s28), 0 }
   0xf   : > { %p795_p7 = por %p53_p6, %p52_p4  ;;  %s34_s8 = ssub.s32 %s696_s24, %s954_s28 }
  0x10   : > { %p525_p8 = scmp.lt.s32.totalorder %s700_s25, 8  ;;  %s36_s9 = sor.u32 %s35_s30, %s34_s8 }
  0x11   : > { %s202_s10 = sand.u32 1, %s680_s20   ;;  %p37_p9 = scmp.eq.s32.totalorder %s36_s9, 0 }
  0x12   : > { %s498_s11 = sshll.u32 %s202_s10, 5  ;;  %s499_s12 = sshll.u32 %s692_s23, 1 }
  0x13   : > { %s805_s13 = scalar_select %p37_p9, %s680_s20, %s39_s29  }
  0x14   : > { %s500_s14 = sshll.u32 %s696_s24, 4  ;;  %s206_s16 = scalar_lea.vmem [#allocation3], %s498_s11 }
  0x15   : > { %s212_s15 = sadd.s32 %s500_s14, %s499_s12  ;;  %s215_s17 = sshll.u32 %s206_s16, 4  ;;  %s808_s17 = int_to_ptr.vmem [resolvable:$true] %s215_s17 }
  0x16   : > { %s501_s18 = sshll.u32 %s212_s15, 7  ;;  %p819_p10 = pnand %p525_p8, %p789_p5 }
  0x17   : > { %s813_s2 = scalar_lea.hbm %s927_s0, %s501_s18  ;;  %s823_s30 = scalar_lea.sflag [#allocation4], %s202_s10 }
  0x18   : > { %s604_s8 = scalar_lea.hbm %s813_s2, 512  ;;  %p606_p12 = pneg %p819_p10 }
  0x19   : > { %p605_p11 = scmp.ne.s32.totalorder %s813_s2, %s604_s8  ;;  %s609_s9 = scalar_lea.hbm %s927_s0, 4096 }
  0x1a   : > { %p610_p1 = scmp.lt.u32.totalorder %s813_s2, %s927_s0  ;;  %p611_p2 = scmp.lt.u32.totalorder %s609_s9, %s604_s8 }
  0x1b   : > { %p607_p13 = pnand %p606_p12, %p605_p11  ;;  %p613_p4 = scmp.lt.u32.totalorder %s604_s8, %s813_s2 }
  0x1c   : > { %p612_p3 = por %p611_p2, %p610_p1 }
  0x1d   : > { %p608_p0 = pneg %p607_p13 }
  0x1e   : > { %p614_p5 = por %p613_p4, %p612_p3 }
  0x20   : > { %p615_p6 = pnand %p614_p5, %p608_p0 }
  0x22   : > { %618 = shalt.err (!%p615_p6)
}
  0x23   : > { %s619_s10 = scalar_lea.vmem %s808_s17, 512  ;;  %s702_s14 = smov [#allocation3]  }
  0x24   : > { %p620_p8 = scmp.ne.s32.totalorder %s808_s17, %s619_s10  ;;  %s624_s15 = sshll.u32 %s702_s14, 4  ;;  %s625_s15 = int_to_ptr.vmem [resolvable:$false] %s624_s15 }
  0x25   : > { %s626_s16 = scalar_lea.vmem %s625_s15, 1024  ;;  %p627_p13 = scmp.lt.s32.totalorder %s808_s17, %s625_s15 }
  0x26   : > { %p622_p9 = pnand %p620_p8, %p606_p12  ;;  %p628_p1 = scmp.lt.s32.totalorder %s626_s16, %s619_s10 }
  0x28   : > { %p623_p11 = pneg %p622_p9  ;;  %p629_p2 = por %p628_p1, %p627_p13 }
  0x2a   : > { %p630_p3 = pnand %p629_p2, %p623_p11 }
  0x2c   : > { %633 = shalt.err (!%p630_p3)
}
  0x2d   : > { %s703_s18 = smov 1024   ;;  %s704_s26 = smov 256  }
  0x2e   : > { %s705_s8 = smov 16   ;;  %p502_p12 = scmp.ge.s32.totalorder %s700_s25, 1 }
  0x2f   : > { %524 = dma.hbm_to_vmem [thread:$0]  (!%p819_p10), %s813_s2, 512, %s808_s17, %s823_s30, %s703_s18, %s704_s26, %s705_s8  }
  0x30   : > { %p239_p0 = scmp.lt.s32.totalorder %s700_s25, 9 }
  0x32   : > { %p240_p4 = pnand %p502_p12, %p239_p0 }
  0x33   : > { %s245_s27 = sand.u32 (!%p240_p4), 1, %s676_s19  }
  0x34   : > { %243 = sbr.rel (%p240_p4) target bundleno = 555 (0x22b), region = 40  ;;  %s503_s6 = sshll.u32 (!%p240_p4), %s245_s27, 5 }
  0x35   : > { %s246_s9 = scalar_lea.sflag (!%p240_p4), [#allocation4], %s245_s27  ;;  %s249_s11 = scalar_lea.vmem (!%p240_p4), [#allocation3], %s503_s6 }
  0x3b   : > { %667 = dma.done.wait (%p795_p7), %s246_s9, 512  }
  0x3c   : > { %669 = vsyncadd (%p795_p7), %s246_s9, 4294966784  ;;  %p287_p5 = scmp.lt.s32.totalorder %s688_s22, 1  ;;  %p510_p7 = scmp.ne.s32.totalorder %s684_s21, 0 }
  0x3d   : > { %vm306_vm0 = vcmask (!%p510_p7), 7168   ;;  %v706_v0 = vmov (!%p510_p7), -inf  }
  0x3e   : > { %s956_s22 = smov (!%p287_p5, %s688_s22), 1  ;;  %305 = sbr.rel (%p510_p7) target bundleno = 69 (0x45), region = 48 }
  0x3f   : > { %s516_s2 = sshll.u32 %s956_s22, 4  ;;  %307 = vst.msk [vmem:[#allocation2] sm:$0xff] (!%p510_p7), %vm306_vm0, %v706_v0  ;;  %308 = vst.msk [vmem:[#allocation2 + $0x8] sm:$0xff] (!%p510_p7), %vm306_vm0, %v706_v0 }
  0x40   : > { %s863_s30 = scalar_lea.vmem %s930_s3, %s516_s2  ;;  %s868_s14 = scalar_lea.vmem %s931_s4, %s516_s2 }
  0x41   : > { %s873_s7 = scalar_lea.vmem %s932_s5, %s516_s2 }
  0x45 PF: > { %v309_v1 = vld [vmem:[%s249_s11] sm:$0xff]  ;;  %v310_v2 = vld [vmem:[%s249_s11 + $0x8] sm:$0xff]  ;;  %v311_v3 = vld [vmem:[%s249_s11 + $0x10] sm:$0xff]  ;;  %vm323_vm1 = vcmask 7168   ;;  %p511_p10 = scmp.ne.s32.totalorder %s684_s21, 3 }
  0x46   : > { %v313_v4 = vmax.f32 %v309_v1, %v310_v2  ;;  %v312_v5 = vld [vmem:[%s249_s11 + $0x18] sm:$0xff]  ;;  %v319_v7 = vld [vmem:[#allocation2] sm:$0xff]  ;;  %v707_v14 = vmov (!%p511_p10), 0   ;;  %vm346_vm2 = vcmask (!%p511_p10), 31744   ;;  %s940_s6 = sld [smem:[#allocation7_spill]] (!%p511_p10) }
  0x47   : > { %v316_v6 = vmax.f32 %v311_v3, %v312_v5  ;;  %v320_v10 = vld [vmem:[#allocation2 + $0x8] sm:$0xff]  ;;  %595 = vset.pattern.permute.xlu0 (!%p511_p10), %v707_v14  ;;  %v332_v16 = vld [vmem:[%s928_s1] sm:$0xff] (!%p511_p10) }
  0x48   : > { %314 = vmax.xlane.f32.xlu0 %v313_v4  ;;  %v333_v18 = vld [vmem:[%s928_s1 + $0x8] sm:$0xff] (!%p511_p10)  ;;  %v379_v46 = vld [vmem:[%s863_s30] sm:$0xff] (!%p511_p10) }
  0x49   : > { %v383_v48 = vld [vmem:[%s868_s14] sm:$0xff] (!%p511_p10)  ;;  %v380_v50 = vld [vmem:[%s863_s30 + $0x8] sm:$0xff] (!%p511_p10) }
  0x4a   : > { %v384_v53 = vld [vmem:[%s868_s14 + $0x8] sm:$0xff] (!%p511_p10) }
  0x4c   : > { %317 = vmax.xlane.f32.xlu0 %v316_v6  ;;  %v357_v31 = vld [vmem:[%s940_s6] sm:$0xff] (!%p511_p10)  ;;  %v358_v33 = vld [vmem:[%s940_s6 + $0x8] sm:$0xff] (!%p511_p10) }
  0xd5   : > { %v315_v8 = vpop.xlane.xlu0 %314 }
  0xd6   : > { %v321_v9 = vmax.f32 %v319_v7, %v315_v8  ;;  %329 = sbr.rel (%p511_p10) target bundleno = 555 (0x22b), region = 52 }
  0xd8   : > { %324 = vst.msk [vmem:[#allocation2] sm:$0xff] %vm323_vm1, %v321_v9 }
  0xd9   : > { %v318_v11 = vpop.xlane.xlu0 %317 }
  0xda   : > { %v322_v12 = vmax.f32 %v320_v10, %v318_v11 }
  0xdc   : > { %325 = vst.msk [vmem:[#allocation2 + $0x8] sm:$0xff] %vm323_vm1, %v322_v12 }
  0xdf   : > { %v330_v13 = vld [vmem:[#allocation2] sm:$0xff] }
  0xe0   : > { %336 = vperm.xlu0 %595, %v330_v13  }
  0xe3   : > { %v331_v15 = vld [vmem:[#allocation2 + $0x8] sm:$0xff] }
  0xe4   : > { %341 = vperm.xlu0 %595, %v331_v15  }
 0x15f   : > { %v337_v17 = vpop.permute.xlu0 %336 }
 0x160   : > { %v344_v19 = vmul.f32 %v337_v17, %v332_v16 }
 0x162   : > { %v347_v22 = vsel %vm346_vm2, %v344_v19, 0.0 }
 0x163   : > { %v342_v20 = vpop.permute.xlu0 %341 }
 0x164   : > { %v345_v21 = vmul.f32 %v342_v20, %v333_v18 }
 0x166   : > { %v348_v23 = vsel %vm346_vm2, %v345_v21, 0.0 }
 0x167   : > { %v349_v24 = vadd.f32 %v348_v23, %v347_v22 }
 0x169   : > { %v350_v25 = vrot.slane %v349_v24, 4 }
 0x16b   : > { %v351_v26 = vadd.f32 %v350_v25, %v349_v24 }
 0x16d   : > { %v352_v27 = vrot.slane %v351_v26, 2 }
 0x16f   : > { %v353_v28 = vadd.f32 %v352_v27, %v351_v26 }
 0x171   : > { %v354_v29 = vrot.slane %v353_v28, 1 }
 0x173   : > { %v355_v30 = vadd.f32 %v354_v29, %v353_v28 }
 0x175   : > { %v356_v32 = vmax.f32 %v355_v30, 0.0 }
 0x177   : > { %v359_v34 = vmul.f32 %v357_v31, %v356_v32  ;;  %v360_v36 = vmul.f32 %v358_v33, %v356_v32 }
 0x179   : > { %v361_v35 = vsel %vm346_vm2, %v359_v34, 0.0  ;;  %v364_v37 = vsel %vm346_vm2, %v360_v36, 0.0 }
 0x17a   : > { %362 = vadd.xlane.f32.xlu1 %v361_v35 }
 0x17e   : > { %365 = vadd.xlane.f32.xlu1 %v364_v37 }
 0x207   : > { %v363_v38 = vpop.xlane.xlu1 %362 }
 0x208   : > { %v512_v39 = vmul.f32 -1.442695, %v363_v38 }
 0x20a   : > { %596 = vpow2.f32 %v512_v39 }
 0x20b   : > { %v366_v40 = vpop.xlane.xlu1 %365 }
 0x20c   : > { %v513_v41 = vmul.f32 -1.442695, %v366_v40 }
 0x20e   : > { %598 = vpow2.f32 %v513_v41 }
 0x214   : > { %v597_v42 = vpop.eup %596 }
 0x215   : > { %v373_v43 = vadd.f32 1.0, %v597_v42 }
 0x217   : > { %600 = vrcp.f32 %v373_v43 }
 0x218   : > { %v599_v44 = vpop.eup %598 }
 0x219   : > { %v374_v45 = vadd.f32 1.0, %v599_v44 }
 0x21b   : > { %602 = vrcp.f32 %v374_v45 }
 0x221   : > { %v601_v47 = vpop.eup %600 }
 0x222   : > { %v381_v49 = vmul.f32 %v601_v47, %v379_v46 }
 0x224   : > { %v385_v51 = vadd.f32 %v383_v48, %v381_v49 }
 0x225   : > { %v603_v52 = vpop.eup %602 }
 0x226   : > { %387 = vst.msk [vmem:[%s873_s7] sm:$0xff] %vm323_vm1, %v385_v51  ;;  %v382_v54 = vmul.f32 %v603_v52, %v380_v50 }
 0x228   : > { %v386_v55 = vadd.f32 %v384_v53, %v382_v54 }
 0x22a   : > { %388 = vst.msk [vmem:[%s873_s7 + $0x8] sm:$0xff] %vm323_vm1, %v386_v55 }
 0x22b PF: > { %s18_s25 = sadd.s32 1, %s700_s25   ;;  %s941_s2 = sld [smem:[#allocation6_spill]] }
 0x22c   : > { %p15_p6 = scmp.ge.s32.totalorder %s18_s25, 10   ;;  %s942_s18 = smov %s676_s19 }
 0x22d   : > { %s943_s19 = smov %s680_s20  ;;  %s944_s20 = smov %s805_s13 }
 0x22e   : > { %s945_s21 = smov %s692_s23  ;;  %s946_s22 = smov %s696_s24 }
 0x22f   : > { %s948_s24 = smov %s954_s28  ;;  %17 = sbr.rel (!%p15_p6) target bundleno = 7 (0x7), region = 94 }
 0x231   : > { %s947_s23 = smov %s941_s2 }
 0x236   :  { %410 = vsyncpa [#allocation4], 1 }
 0x237   :  { %412 = vsyncpa [#allocation4 + $0x1], 1 }

</bundles_post_ra>
